<compile_context>
chip_gen: v7x
topology: tpu7x:2x2x1
jax: 0.10.0
libtpu: 0.0.40
codegen_flags: <defaults>
</compile_context>

<pallas_src>
import functools

import jax
import jax.numpy as jnp
from jax.experimental import pallas as pl
from jax.experimental.pallas import tpu as pltpu

LOG_STD_MAX = 2.0
LOG_STD_MIN = -5.0
_C1 = 0.5 * (LOG_STD_MAX - LOG_STD_MIN)   # 3.5
_C0 = LOG_STD_MIN + _C1                   # -1.5


def _round_up(a, m):
    return ((a + m - 1) // m) * m


def _adapter_actor_kernel(x_ref, w_ref, b_ref, out_ref, *,
                          obs_dim, hidden, act_dim):
    """Batch-on-lanes fused forward for one batch tile.

    x_ref:   [TB, obs_dim] f32  (natural layout; transposed in-kernel)
    w_ref:   [4H + 2A, wcols] bf16 packed transposed weights
               rows [0, 2H)       : block_diag(tw1, aw1)^T  (cols [0, obs_dim))
               rows [2H, 4H)      : block_diag(tw2, aw2)^T  (cols [0, 2H))
               rows [4H, 4H + 2A) : [mw | lw]^T             (cols [0, H))
    b_ref:   [max(2H, 2A), 3] f32 columns: [tb1|ab1]^T, [tb2|ab2]^T, [mb|lb]^T
    out_ref: [2A, TB] f32  rows [0, A) = mean, rows [A, 2A) = raw->log_std
    """
    H = hidden
    H2 = 2 * H
    A2 = 2 * act_dim

    # Batch on lanes: transpose the x tile (XLU slot, otherwise idle) and cast
    # MXU operands to bf16; accumulate and run the epilogue in f32.
    x_t = x_ref[...].T.astype(jnp.bfloat16)                 # [obs_dim, TB]

    w1t = w_ref[0:H2, 0:obs_dim]                            # [2H, obs_dim] bf16
    w2t = w_ref[H2:2 * H2, 0:H2]                            # [2H, 2H]      bf16
    wht = w_ref[2 * H2:2 * H2 + A2, 0:H]                    # [2A, H]       bf16
    b1 = b_ref[0:H2, 0:1]                                   # [2H, 1] f32
    b2 = b_ref[0:H2, 1:2]                                   # [2H, 1] f32
    bh = b_ref[0:A2, 2:3]                                   # [2A, 1] f32

    # Fused layer 1 (trunk + adapter) -> ReLU
    h1 = jnp.maximum(
        jnp.dot(w1t, x_t, preferred_element_type=jnp.float32) + b1, 0.0)
    # Fused layer 2 (trunk + adapter), no final activation
    h2 = jnp.dot(w2t, h1.astype(jnp.bfloat16),
                 preferred_element_type=jnp.float32) + b2   # [2H, TB]
    # Contextualize: trunk features * adapter features
    nf = (h2[0:H, :] * h2[H:H2, :]).astype(jnp.bfloat16)    # [H, TB]
    # Fused heads: rows [0, A) -> mean, rows [A, 2A) -> raw log_std
    head = jnp.dot(wht, nf, preferred_element_type=jnp.float32) + bh  # [2A, TB]

    # tanh-affine only on the log_std rows; mean rows pass through.
    row = jax.lax.broadcasted_iota(jnp.int32, head.shape, 0)
    out = jnp.where(row < act_dim, head, _C0 + _C1 * jnp.tanh(head))
    out_ref[...] = out.astype(out_ref.dtype)


@functools.partial(jax.jit, static_argnames=("act_dim",))
def adapter_actor_forward(x, w_slab, b_slab, *, act_dim):
    """x: [B, obs_dim] f32; (w_slab, b_slab) from pack_params.
    Returns (mean [B, act_dim], log_std [B, act_dim])."""
    B, obs_dim = x.shape
    A2 = 2 * act_dim
    H = (w_slab.shape[0] - A2) // 4     # slab rows = 4H + 2*act_dim

    # Tiling:
    #   * small/medium batch -> one grid step (splitting a tiny batch is pure
    #     per-step overhead on single-TensorCore v5e/v6e);
    #   * large batch -> >=4 steps of up to 8192 rows each, multiples of 128 so
    #     the lane-major [2A, TB] output blocks tile cleanly; keeps both v7x
    #     TensorCores busy while preserving per-core double buffering.
    B8 = _round_up(B, 8)
    if B8 <= 2048:
        TB = B8
    else:
        TB = min(8192, _round_up(pl.cdiv(B8, 4), 128))
    B_pad = _round_up(B8, TB)
    if B_pad != B:
        x = jnp.pad(x, ((0, B_pad - B), (0, 0)))
    grid = (B_pad // TB,)

    kernel = functools.partial(_adapter_actor_kernel,
                               obs_dim=obs_dim, hidden=H, act_dim=act_dim)

    cost = pl.CostEstimate(
        flops=int(2 * B_pad * (obs_dim * 2 * H + 4 * H * H + H * A2)),
        transcendentals=int(B_pad * A2),
        bytes_accessed=int(4 * B_pad * (obs_dim + A2)
                           + 2 * w_slab.size + 4 * b_slab.size),
    )

    out = pl.pallas_call(
        kernel,
        grid=grid,
        in_specs=[
            pl.BlockSpec((TB, obs_dim), lambda i: (i, 0)),
            # Constant index_map: the tiny bf16 weight slab stays resident in
            # VMEM; Pallas does not refetch it across grid steps.
            pl.BlockSpec(w_slab.shape, lambda i: (0, 0)),
            pl.BlockSpec(b_slab.shape, lambda i: (0, 0)),
        ],
        # Lane-major output: batch on the dense 128-wide lane axis.
        out_specs=pl.BlockSpec((A2, TB), lambda i: (0, i)),
        out_shape=jax.ShapeDtypeStruct((A2, B_pad), jnp.float32),
        compiler_params=pltpu.CompilerParams(
            dimension_semantics=("parallel",)),
        cost_estimate=cost,
    )(x, w_slab, b_slab)

    mean = out[:act_dim, :B].T
    log_std = out[act_dim:, :B].T
    return mean, log_std


def init_params(key, state_dim, context_dim, hidden, act_dim):
    """PyTorch-Linear-style init: U(-1/sqrt(fan_in), 1/sqrt(fan_in)).
    Weights stored as [in, out]; biases as [1, out]."""
    def linear(k, fan_in, fan_out):
        kw, kb = jax.random.split(k)
        bound = 1.0 / jnp.sqrt(float(fan_in))
        w = jax.random.uniform(kw, (fan_in, fan_out), jnp.float32, -bound, bound)
        b = jax.random.uniform(kb, (1, fan_out), jnp.float32, -bound, bound)
        return w, b

    ks = jax.random.split(key, 6)
    tw1, tb1 = linear(ks[0], state_dim, hidden)
    tw2, tb2 = linear(ks[1], hidden, hidden)
    aw1, ab1 = linear(ks[2], context_dim, hidden)
    aw2, ab2 = linear(ks[3], hidden, hidden)
    mw, mb = linear(ks[4], hidden, act_dim)
    lw, lb = linear(ks[5], hidden, act_dim)
    return (tw1, tb1, tw2, tb2, aw1, ab1, aw2, ab2, mw, mb, lw, lb)


def pack_params(params, state_dim, context_dim):
    """Pack the 12 Linear params into 2 slabs (done once, not per call).

    Weights are stored transposed ([out, in]) for the batch-on-lanes kernel,
    trunk/adapter block-diagonal fused, heads column-concatenated, row blocks
    at 16-aligned offsets 0 / 2H / 4H, and cast to bf16 (MXU-native).
    Biases are f32 columns of a [max(2H, 2A), 3] slab.
    """
    (tw1, tb1, tw2, tb2, aw1, ab1, aw2, ab2, mw, mb, lw, lb) = params
    H = tw2.shape[0]
    A = mw.shape[1]
    H2, A2 = 2 * H, 2 * A
    obs_dim = state_dim + context_dim
    wcols = max(obs_dim, H2, H)

    w1t = jnp.block([[tw1.T, jnp.zeros((H, context_dim), jnp.float32)],
                     [jnp.zeros((H, state_dim), jnp.float32), aw1.T]])  # [2H, obs]
    zhh = jnp.zeros((H, H), jnp.float32)
    w2t = jnp.block([[tw2.T, zhh], [zhh, aw2.T]])                       # [2H, 2H]
    wht = jnp.concatenate([mw.T, lw.T], axis=0)                         # [2A, H]

    def padc(a):
        return jnp.pad(a, ((0, 0), (0, wcols - a.shape[1])))

    w_slab = jnp.concatenate([padc(w1t), padc(w2t), padc(wht)],
                             axis=0).astype(jnp.bfloat16)               # [4H+2A, wcols]

    rows = max(H2, A2)

    def padr(a):
        return jnp.pad(a, ((0, rows - a.shape[0]), (0, 0)))

    b1t = jnp.concatenate([tb1, ab1], axis=1).T                         # [2H, 1]
    b2t = jnp.concatenate([tb2, ab2], axis=1).T                         # [2H, 1]
    bht = jnp.concatenate([mb, lb], axis=1).T                           # [2A, 1]
    b_slab = jnp.concatenate([padr(b1t), padr(b2t), padr(bht)], axis=1)  # [rows, 3]
    return w_slab, b_slab


def reference_forward(x, params, context_dim):
    (tw1, tb1, tw2, tb2, aw1, ab1, aw2, ab2, mw, mb, lw, lb) = params
    xs = x[:, :-context_dim]
    xc = x[:, -context_dim:]
    sf = jnp.maximum(xs @ tw1 + tb1, 0.0) @ tw2 + tb2
    cf = jnp.maximum(xc @ aw1 + ab1, 0.0) @ aw2 + ab2
    nf = sf * cf
    mean = nf @ mw + mb
    ls = jnp.tanh(nf @ lw + lb)
    ls = LOG_STD_MIN + 0.5 * (LOG_STD_MAX - LOG_STD_MIN) * (ls + 1.0)
    return mean, ls


if __name__ == "__main__":
    # Shapes consistent with the module: obs_dim = state_dim + context_dim,
    # net_arch = adapter_net_arch = [32, 32], act_dim from the action space.
    state_dim = 6
    context_dim = 2
    hidden = 32
    act_dim = 2
    obs_dim = state_dim + context_dim

    key = jax.random.PRNGKey(0)
    k_x, k_p, k_x2 = jax.random.split(key, 3)
    params = init_params(k_p, state_dim, context_dim, hidden, act_dim)
    w_slab, b_slab = pack_params(params, state_dim, context_dim)

    # bf16 MXU operands (f32 accumulation/epilogue) -> relaxed tolerance.
    ATOL = RTOL = 1e-2

    # 1) Small batch: single grid-step path.
    B = 8
    x = jax.random.normal(k_x, (B, obs_dim), dtype=jnp.float32)
    mean, log_std = adapter_actor_forward(x, w_slab, b_slab, act_dim=act_dim)
    jax.block_until_ready((mean, log_std))
    mean_ref, log_std_ref = reference_forward(x, params, context_dim)
    assert mean.shape == (B, act_dim) and log_std.shape == (B, act_dim)
    assert jnp.allclose(mean, mean_ref, atol=ATOL, rtol=RTOL)
    assert jnp.allclose(log_std, log_std_ref, atol=ATOL, rtol=RTOL)

    # 2) Larger batch: multi-step tiled/padded grid path.
    B2 = 2500
    x2 = jax.random.normal(k_x2, (B2, obs_dim), dtype=jnp.float32)
    mean2, log_std2 = adapter_actor_forward(x2, w_slab, b_slab, act_dim=act_dim)
    jax.block_until_ready((mean2, log_std2))
    mean2_ref, log_std2_ref = reference_forward(x2, params, context_dim)
    assert mean2.shape == (B2, act_dim) and log_std2.shape == (B2, act_dim)
    assert jnp.allclose(mean2, mean2_ref, atol=ATOL, rtol=RTOL)
    assert jnp.allclose(log_std2, log_std2_ref, atol=ATOL, rtol=RTOL)

    print("KERNEL_OK")
</pallas_src>

<mosaic_0001>
module attributes {stable_mosaic.version = 11 : i64} {
  func.func @_adapter_actor_kernel(%arg0: i32, %arg1: memref<8x8xf32, #tpu.memory_space<vmem>>, %arg2: memref<132x64xbf16, #tpu.memory_space<vmem>>, %arg3: memref<64x3xf32, #tpu.memory_space<vmem>>, %arg4: memref<4x8xf32, #tpu.memory_space<vmem>>) attributes {dimension_semantics = [#tpu.dimension_semantics<parallel>], iteration_bounds = array<i64: 1>, scalar_prefetch = 0 : i64, scratch_operands = 0 : i64, tpu.core_type = #tpu.core_type<tc>, window_params = [{transform_indices = @transform_0, window_bounds = array<i64: 8, 8>}, {pipeline_mode = #tpu.pipeline_mode<synchronous>, transform_indices = @transform_1, window_bounds = array<i64: 132, 64>}, {pipeline_mode = #tpu.pipeline_mode<synchronous>, transform_indices = @transform_2, window_bounds = array<i64: 64, 3>}, {transform_indices = @transform_3, window_bounds = array<i64: 4, 8>}]} {
    %c0 = arith.constant 0 : index
    %c0_0 = arith.constant 0 : index
    %0 = vector.load %arg1[%c0, %c0_0] : memref<8x8xf32, #tpu.memory_space<vmem>>, vector<8x8xf32>
    %1 = tpu.transpose %0, [1, 0] : vector<8x8xf32> -> vector<8x8xf32>
    %2 = arith.truncf %1 : vector<8x8xf32> to vector<8x8xbf16>
    %c0_1 = arith.constant 0 : index
    %c0_2 = arith.constant 0 : index
    %3 = vector.load %arg2[%c0_1, %c0_2] : memref<132x64xbf16, #tpu.memory_space<vmem>>, vector<64x8xbf16>
    %c64 = arith.constant 64 : index
    %c0_3 = arith.constant 0 : index
    %4 = vector.load %arg2[%c64, %c0_3] : memref<132x64xbf16, #tpu.memory_space<vmem>>, vector<64x64xbf16>
    %c128 = arith.constant 128 : index
    %c0_4 = arith.constant 0 : index
    %5 = vector.load %arg2[%c128, %c0_4] : memref<132x64xbf16, #tpu.memory_space<vmem>>, vector<4x32xbf16>
    %c0_5 = arith.constant 0 : index
    %c0_6 = arith.constant 0 : index
    %6 = vector.load %arg3[%c0_5, %c0_6] : memref<64x3xf32, #tpu.memory_space<vmem>>, vector<64x1xf32>
    %c0_7 = arith.constant 0 : index
    %c1 = arith.constant 1 : index
    %7 = vector.load %arg3[%c0_7, %c1] : memref<64x3xf32, #tpu.memory_space<vmem>>, vector<64x1xf32>
    %c0_8 = arith.constant 0 : index
    %c2 = arith.constant 2 : index
    %8 = vector.load %arg3[%c0_8, %c2] : memref<64x3xf32, #tpu.memory_space<vmem>>, vector<4x1xf32>
    %cst = arith.constant dense<0.000000e+00> : vector<64x8xf32>
    %9 = tpu.matmul %3, %2, %cst {dimension_numbers = #tpu.dot_dimension_numbers<[1], [0], [0], [1], [0, 0, 1, 1], [], []>} : vector<64x8xbf16>, vector<8x8xbf16>, vector<64x8xf32> -> vector<64x8xf32>
    %10 = vector.broadcast %6 : vector<64x1xf32> to vector<64x8xf32>
    %11 = arith.addf %9, %10 : vector<64x8xf32>
    %cst_9 = arith.constant 0.000000e+00 : f32
    %12 = vector.broadcast %cst_9 : f32 to vector<64x8xf32>
    %13 = arith.maximumf %11, %12 : vector<64x8xf32>
    %14 = arith.truncf %13 : vector<64x8xf32> to vector<64x8xbf16>
    %cst_10 = arith.constant dense<0.000000e+00> : vector<64x8xf32>
    %15 = tpu.matmul %4, %14, %cst_10 {dimension_numbers = #tpu.dot_dimension_numbers<[1], [0], [0], [1], [0, 0, 1, 1], [], []>} : vector<64x64xbf16>, vector<64x8xbf16>, vector<64x8xf32> -> vector<64x8xf32>
    %16 = vector.broadcast %7 : vector<64x1xf32> to vector<64x8xf32>
    %17 = arith.addf %15, %16 : vector<64x8xf32>
    %18 = vector.extract_strided_slice %17 {offsets = [0, 0], sizes = [32, 8], strides = [1, 1]} : vector<64x8xf32> to vector<32x8xf32>
    %19 = vector.extract_strided_slice %17 {offsets = [32, 0], sizes = [32, 8], strides = [1, 1]} : vector<64x8xf32> to vector<32x8xf32>
    %20 = arith.mulf %18, %19 : vector<32x8xf32>
    %21 = arith.truncf %20 : vector<32x8xf32> to vector<32x8xbf16>
    %cst_11 = arith.constant dense<0.000000e+00> : vector<4x8xf32>
    %22 = tpu.matmul %5, %21, %cst_11 {dimension_numbers = #tpu.dot_dimension_numbers<[1], [0], [0], [1], [0, 0, 1, 1], [], []>} : vector<4x32xbf16>, vector<32x8xbf16>, vector<4x8xf32> -> vector<4x8xf32>
    %23 = vector.broadcast %8 : vector<4x1xf32> to vector<4x8xf32>
    %24 = arith.addf %22, %23 : vector<4x8xf32>
    %25 = tpu.iota {dimensions = array<i32: 0>} : vector<4x8xi32>
    %c2_i32 = arith.constant 2 : i32
    %26 = vector.broadcast %c2_i32 : i32 to vector<4x8xi32>
    %27 = arith.cmpi slt, %25, %26 : vector<4x8xi32>
    %28 = math.tanh %24 : vector<4x8xf32>
    %cst_12 = arith.constant 3.500000e+00 : f32
    %29 = vector.broadcast %cst_12 : f32 to vector<4x8xf32>
    %30 = arith.mulf %29, %28 : vector<4x8xf32>
    %cst_13 = arith.constant -1.500000e+00 : f32
    %31 = vector.broadcast %cst_13 : f32 to vector<4x8xf32>
    %32 = arith.addf %31, %30 : vector<4x8xf32>
    %33 = arith.select %27, %24, %32 : vector<4x8xi1>, vector<4x8xf32>
    %c0_14 = arith.constant 0 : index
    %c0_15 = arith.constant 0 : index
    %34 = vector.load %arg4[%c0_14, %c0_15] : memref<4x8xf32, #tpu.memory_space<vmem>>, vector<4x8xf32>
    tpu.vector_store %arg4[%c0_14, %c0_15], %33 {strides = array<i32>} : memref<4x8xf32, #tpu.memory_space<vmem>>, vector<4x8xf32>,
    return
  }
  func.func @transform_0(%arg0: i32) -> (i32, i32) {
    %c0_i32 = arith.constant 0 : i32
    %c0_i32_0 = arith.constant 0 : i32
    return %arg0, %c0_i32 : i32, i32
  }
  func.func @transform_1(%arg0: i32) -> (i32, i32) {
    %c0_i32 = arith.constant 0 : i32
    %c0_i32_0 = arith.constant 0 : i32
    %c0_i32_1 = arith.constant 0 : i32
    return %c0_i32, %c0_i32_0 : i32, i32
  }
  func.func @transform_2(%arg0: i32) -> (i32, i32) {
    %c0_i32 = arith.constant 0 : i32
    %c0_i32_0 = arith.constant 0 : i32
    %c0_i32_1 = arith.constant 0 : i32
    return %c0_i32, %c0_i32_0 : i32, i32
  }
  func.func @transform_3(%arg0: i32) -> (i32, i32) {
    %c0_i32 = arith.constant 0 : i32
    %c0_i32_0 = arith.constant 0 : i32
    return %c0_i32, %arg0 : i32, i32
  }
}

</mosaic_0001>

<bundles_post_ra>
// kernel: adapter_actor_forward.1
= control target key start
LH: loop header
LB: loop body
LE: loop exit
PB: predicated region body
PF: predicated region fallthrough
CT: control target
= control target key end

     0   :  { %vm135_vm0 = vcmask 64512   ;;  %v515_v2 = vmov 0   ;;  %vm148_vm1 = vcmask 1043456   ;;  %vm281_vm2 = vcmask 523264   ;;  %s608_s0 = inlined_call_operand.vmem [shape: f32[8,8], index: 0, kind: input, shape index: {}]   ;;  %s609_s1 = inlined_call_operand.vmem [shape: bf16[132,64], index: 1, kind: input, shape index: {}]   ;;  %s610_s2 = inlined_call_operand.vmem [shape: f32[64,3], index: 2, kind: input, shape index: {}]   ;;  %s611_s3 = inlined_call_operand.vmem [shape: f32[4,8], index: 3, kind: output, shape index: {}]  }
   0x1   :  { %v15_v0 = vld [vmem:[%s608_s0] sm:$0xff]  ;;  %501 = vset.pattern.permute.xlu1 %v515_v2  ;;  %v67_v3 = vld [vmem:[%s610_s2 + $0x8] sm:$0xff]  ;;  %v68_v4 = vld [vmem:[%s610_s2 + $0x10] sm:$0xff]  ;;  %v516_v18 = vmov 1   ;;  %v517_v58 = vmov 0.0   ;;  %vm518_vm3 = vmmov 0  }
   0x2   :  { %16 = vxpose.xlu0.b32.start.end [1/1] (short) (narrow) %v15_v0, 8  ;;  %v505_v1 = vld [vmem:[%s609_s1] sm:$0xff]   ;;  %82 = vperm.xlu1 %501, %v67_v3   ;;  %v69_v5 = vld [vmem:[%s610_s2 + $0x18] sm:$0xff]  ;;  %v71_v7 = vld [vmem:[%s610_s2 + $0x28] sm:$0xff]  ;;  %v519_v60 = vmov 2   ;;  %vm370_vm4 = vcmask 261120  }
   0x3   :  { %462 = vmatprep.mubr.msk.bf16.mxu0 %vm135_vm0, %v505_v1  ;;  %v70_v6 = vld [vmem:[%s610_s2 + $0x20] sm:$0xff]  ;;  %v72_v8 = vld [vmem:[%s610_s2 + $0x30] sm:$0xff]  ;;  %v73_v9 = vld [vmem:[%s610_s2 + $0x38] sm:$0xff]  ;;  %vm421_vm6 = vcmask 60416  }
   0x4   :  { %v66_v10 = vld [vmem:[%s610_s2] sm:$0xff]  ;;  %v506_v14 = vld [vmem:[%s609_s1 + $0x8] sm:$0xff]   ;;  %v507_v15 = vld [vmem:[%s609_s1 + $0x10] sm:$0xff]  }
   0x5   :  { %v508_v16 = vld [vmem:[%s609_s1 + $0x18] sm:$0xff]   ;;  %v509_v17 = vld [vmem:[%s609_s1 + $0x20] sm:$0xff]   ;;  %v510_v55 = vld [vmem:[%s609_s1 + $0x28] sm:$0xff]  }
   0x6   :  { %87 = vperm.xlu1 %501, %v68_v4   ;;  %478 = vmatprep.mubr.msk.bf16.mxu1 %vm281_vm2, %v509_v17  ;;  %v511_v56 = vld [vmem:[%s609_s1 + $0x30] sm:$0xff]   ;;  %v512_v57 = vld [vmem:[%s609_s1 + $0x38] sm:$0xff]   ;;  %v74_v59 = vld [vmem:[%s610_s2] sm:$0xf] }
   0xa   :  { %92 = vperm.xlu1 %501, %v69_v5  }
   0xe   :  { %97 = vperm.xlu1 %501, %v70_v6  }
  0x12   :  { %102 = vperm.xlu1 %501, %v71_v7  }
  0x16   :  { %107 = vperm.xlu1 %501, %v72_v8  }
  0x1a   :  { %112 = vperm.xlu1 %501, %v73_v9  }
  0x1e   :  { %502 = vset.pattern.permute.xlu1 %v516_v18 }
  0x1f   :  { %230 = vperm.xlu1 %502, %v66_v10  }
  0x23   :  { %234 = vperm.xlu1 %502, %v67_v3  }
  0x27   :  { %246 = vperm.xlu1 %502, %v70_v6  }
  0x2b   :  { %500 = vset.pattern.permute.xlu0 %v515_v2  ;;  %250 = vperm.xlu1 %502, %v71_v7  }
  0x2c   :  { %77 = vperm.xlu0 %500, %v66_v10  }
  0x2f   :  { %238 = vperm.xlu1 %502, %v68_v4  }
  0x30   :  { %503 = vset.pattern.permute.xlu0 %v516_v18 }
  0x31   :  { %242 = vperm.xlu0 %503, %v69_v5  }
  0x33   :  { %254 = vperm.xlu1 %502, %v72_v8  }
  0x35   :  { %504 = vset.pattern.permute.xlu0 %v519_v60 }
  0x36   :  { %367 = vperm.xlu0 %504, %v74_v59  }
  0x37   :  { %258 = vperm.xlu1 %502, %v73_v9  }
  0x81   :  { %v83_v19 = vpop.permute.xlu1 %82 }
  0x82   :  { %v32_v11 = vpop.trf.xlu0 }
  0x83   :  { %v48_v12 = vpack.c.bf16 %v32_v11, %v32_v11 }
  0x85   :  { %494 = vmatprep.subr.msk.bf16.mxu0 %vm148_vm1, %v48_v12  ;;  %v150_v13 = vsel %vm148_vm1, %v48_v12, 0  ;;  %v88_v20 = vpop.permute.xlu1 %87 }
  0x86   :  { %461 = vmatpush3.bf16.msra.mxu0 %v150_v13 }
  0x87   :  { %486 = vmatprep.subr.bf16.mxu0 %v517_v58 }
  0x89   :  { %463 = vmatmul.mubr.msk.bf16.vlgmr.msra.gmra.mrb[0].mxu0 %vm135_vm0, %v506_v14  ;;  %v93_v21 = vpop.permute.xlu1 %92 }
  0x8a   :  { %466 = vmatprep.mubr.msk.bf16.mxu0 %vm135_vm0, %v507_v15 }
  0x8d   :  { %v98_v22 = vpop.permute.xlu1 %97 }
  0x91   :  { %467 = vmatmul.mubr.msk.bf16.gmra.mrb[4].mxu0 %vm135_vm0, %v508_v16  ;;  %v103_v23 = vpop.permute.xlu1 %102 }
  0x92   :  { %490 = vmatprep.mubr.msk.bf16.mxu0 %vm518_vm3, %v517_v58 }
  0x95   :  { %v108_v32 = vpop.permute.xlu1 %107 }
  0x99   :  { %v113_v43 = vpop.permute.xlu1 %112 }
  0x9e   :  { %v231_v61 = vpop.permute.xlu1 %230 }
  0xa2   :  { %v235_v62 = vpop.permute.xlu1 %234 }
  0xa6   :  { %v247_v63 = vpop.permute.xlu1 %246 }
  0xaa   :  { %v251_v0 = vpop.permute.xlu1 %250 }
  0xab   :  { %v78_v24 = vpop.permute.xlu0 %77 }
  0xae   :  { %v239_v1 = vpop.permute.xlu1 %238 }
  0xb0   :  { %v243_v7 = vpop.permute.xlu0 %242 }
  0xb2   :  { %v255_v6 = vpop.permute.xlu1 %254 }
  0xb6   :  { %v259_v12 = vpop.permute.xlu1 %258 }
 0x15c   :  { %v464_v25 = vpop.f32.mrb[0].mxu0 }
 0x15d   :  { %v195_v26 = vadd.f32 %v464_v25, %v88_v20  ;;  %v186_v27 = vpop.f32.mrb[1].mxu0 }
 0x15e   :  { %v187_v28 = vadd.f32 %v186_v27, %v78_v24  ;;  %v465_v29 = vpop.f32.mrb[2].mxu0  ;;  %v65_v27 = vld [vmem:[%s609_s1 + $0x40] sm:$0x3] }
 0x15f   :  { %v198_v30 = vadd.f32 %v465_v29, %v93_v21  ;;  %v189_v31 = vpop.f32.mrb[3].mxu0  ;;  %v219_v34 = vmax.f32 %v195_v26, 0.0 }
 0x160   :  { %v190_v33 = vadd.f32 %v189_v31, %v83_v19  ;;  %v217_v36 = vmax.f32 %v187_v28, 0.0  ;;  %v368_v28 = vpop.permute.xlu0 %367 }
 0x161   :  { %v220_v35 = vmax.f32 %v198_v30, 0.0 }
 0x162   :  { %v218_v37 = vmax.f32 %v190_v33, 0.0 }
 0x163   :  { %v226_v38 = vpack.c.bf16 %v220_v35, %v219_v34  ;;  %v414_v34 = vlaneseq }
 0x164   :  { %v468_v39 = vpop.f32.mrb[4].mxu0  ;;  %v225_v40 = vpack.c.bf16 %v218_v37, %v217_v36 }
 0x165   :  { %v211_v41 = vadd.f32 %v468_v39, %v108_v32  ;;  %v202_v42 = vpop.f32.mrb[5].mxu0  ;;  %v415_v35 = vshrl.u32 %v414_v34, 7 }
 0x166   :  { %v203_v44 = vadd.f32 %v202_v42, %v98_v22  ;;  %v469_v45 = vpop.f32.mrb[6].mxu0  ;;  %470 = vmatprep.subr.bf16.mxu1 %v225_v40 }
 0x167   :  { %v214_v46 = vadd.f32 %v469_v45, %v113_v43  ;;  %v205_v47 = vpop.f32.mrb[7].mxu0  ;;  %471 = vmatpush3.bf16.msra.mxu1 %v225_v40  ;;  %v223_v49 = vmax.f32 %v211_v41, 0.0  ;;  %vm416_vm5 = vcmp.lt.s32.totalorder %v415_v35, 2 }
 0x168   :  { %v206_v48 = vadd.f32 %v205_v47, %v103_v23  ;;  %472 = vmatprep.subr.bf16.mxu1 %v226_v38  ;;  %v221_v51 = vmax.f32 %v203_v44, 0.0 }
 0x169   :  { %v224_v50 = vmax.f32 %v214_v46, 0.0 }
 0x16a   :  { %v222_v52 = vmax.f32 %v206_v48, 0.0 }
 0x16b   :  { %v228_v53 = vpack.c.bf16 %v224_v50, %v223_v49  ;;  %473 = vmatpush3.bf16.msra.mxu1 %v226_v38 }
 0x16c   :  { %v227_v54 = vpack.c.bf16 %v222_v52, %v221_v51 }
 0x16e   :  { %474 = vmatprep.subr.bf16.mxu1 %v227_v54 }
 0x16f   :  { %475 = vmatpush3.bf16.msra.mxu1 %v227_v54 }
 0x170   :  { %476 = vmatprep.subr.bf16.mxu1 %v228_v53 }
 0x173   :  { %477 = vmatpush3.bf16.msra.mxu1 %v228_v53 }
 0x176   :  { %479 = vmatmul.mubr.msk.bf16.vlgmr.msra.gmra.mrb[0].mxu1 %vm281_vm2, %v510_v55 }
 0x177   :  { %482 = vmatprep.mubr.msk.bf16.mxu1 %vm281_vm2, %v511_v56 }
 0x17e   :  { %483 = vmatmul.mubr.msk.bf16.gmra.mrb[4].mxu1 %vm281_vm2, %v512_v57 }
 0x249   :  { %v480_v2 = vpop.f32.mrb[0].mxu1 }
 0x24a   :  { %v328_v3 = vpop.f32.mrb[1].mxu1  ;;  %v337_v9 = vadd.f32 %v480_v2, %v239_v1 }
 0x24b   :  { %v481_v4 = vpop.f32.mrb[2].mxu1  ;;  %v329_v13 = vadd.f32 %v328_v3, %v231_v61 }
 0x24c   :  { %v331_v5 = vpop.f32.mrb[3].mxu1  ;;  %v340_v16 = vadd.f32 %v481_v4, %v243_v7 }
 0x24d   :  { %v332_v20 = vadd.f32 %v331_v5, %v235_v62 }
 0x251   :  { %v484_v8 = vpop.f32.mrb[4].mxu1 }
 0x252   :  { %v353_v10 = vadd.f32 %v484_v8, %v255_v6  ;;  %v344_v11 = vpop.f32.mrb[5].mxu1 }
 0x253   :  { %v345_v14 = vadd.f32 %v344_v11, %v247_v63  ;;  %v485_v15 = vpop.f32.mrb[6].mxu1 }
 0x254   :  { %v361_v17 = vmul.f32 %v353_v10, %v337_v9  ;;  %v356_v18 = vadd.f32 %v485_v15, %v259_v12  ;;  %v347_v19 = vpop.f32.mrb[7].mxu1 }
 0x255   :  { %v359_v21 = vmul.f32 %v345_v14, %v329_v13  ;;  %v348_v22 = vadd.f32 %v347_v19, %v251_v0 }
 0x256   :  { %v362_v23 = vmul.f32 %v356_v18, %v340_v16 }
 0x257   :  { %v360_v24 = vmul.f32 %v348_v22, %v332_v20 }
 0x258   :  { %v364_v25 = vpack.c.bf16 %v362_v23, %v361_v17 }
 0x259   :  { %v363_v26 = vpack.c.bf16 %v360_v24, %v359_v21 }
 0x25b   :  { %487 = vmatpush3.bf16.msra.mxu0 %v363_v26 }
 0x25c   :  { %488 = vmatprep.subr.bf16.mxu0 %v517_v58 }
 0x25f   :  { %489 = vmatpush3.bf16.msra.mxu0 %v364_v25 }
 0x262   :  { %491 = vmatmul.mubr.msk.bf16.vlgmr.msra.gmra.mrb[8].mxu0 %vm370_vm4, %v65_v27 }
 0x335   :  { %v408_v29 = vpop.f32.mrb[8].mxu0 }
 0x336   :  { %v409_v30 = vadd.f32 %v408_v29, %v368_v28  ;;  %v492_v31 = vpop.f32.mrb[9].mxu0 }
 0x337   :  { %v411_v32 = vpop.f32.mrb[10].mxu0 }
 0x338   :  { %513 = vtanh.f32 %v409_v30  ;;  %v493_v33 = vpop.f32.mrb[11].mxu0 }
 0x342   :  { %v514_v36 = vpop.eup %513 }
 0x343   :  { %v418_v37 = vmul.f32 3.5, %v514_v36 }
 0x345   :  { %v419_v38 = vadd.f32 -1.5, %v418_v37 }
 0x347   :  { %v420_v39 = vsel %vm416_vm5, %v409_v30, %v419_v38 }
 0x348   :  { %422 = vst.msk [vmem:[%s611_s3] sm:$0xf] %vm421_vm6, %v420_v39 }

</bundles_post_ra>
